<compile_context>
chip_gen: v7x
topology: tpu7x:2x2x1
jax: 0.10.0
libtpu: 0.0.40
codegen_flags: <defaults>
</compile_context>

<pallas_src>
import math

import jax
import jax.numpy as jnp
from jax.experimental import pallas as pl
from jax.experimental.pallas import tpu as pltpu

EPS = 1e-05

# ~4 MiB per-operand blocks: with input + output double-buffering (~16 MiB
# live) this fits every chip's physical VMEM (v7x: 64 MiB) once the scoped
# limit below is applied (v5e's default scoped limit is only 16 MiB).
_BLOCK_BUDGET_BYTES = 4 * 1024 * 1024
_VMEM_LIMIT_BYTES = 32 * 1024 * 1024


def _largest_aligned_divisor(n: int, align: int, cap: int) -> int:
    """Largest d with d % align == 0, d | n, d <= cap.  0 if none exists."""
    if n % align != 0:
        return 0
    d = min(n, max(align, cap))
    d -= d % align
    while d >= align:
        if n % d == 0:
            return d
        d -= align
    return 0


def _pick_cols(out_cols: int, budget_elems: int, min_rows: int) -> int:
    """Column block size. Prefer the full width (one contiguous HBM run per
    tile); otherwise the largest 128-multiple divisor within the budget."""
    if out_cols % 128 != 0 or out_cols * min_rows <= budget_elems:
        # Full-width block: fully contiguous DMA, and the only legal lane block
        # when out_cols isn't a multiple of 128 (full-dim blocks are exempt).
        return out_cols
    cap = max(128, budget_elems // min_rows)
    return _largest_aligned_divisor(out_cols, 128, cap) or out_cols


def _pick_rows(rows: int, bc: int, budget_elems: int) -> int:
    """Row block size: largest multiple of 8 dividing `rows` that keeps the
    (br, bc) block inside the per-operand budget."""
    if rows % 8 != 0:
        # TODO(synk): rows not a multiple of 8 -> single full-height block; for
        # very large unaligned row counts this could exceed VMEM.
        return rows
    cap = max(8, budget_elems // max(bc, 1))
    br = max(8, min(rows, cap - cap % 8))
    while rows % br != 0:
        br -= 8
    return br


# ----------------------------- kernel -------------------------------------- #
def _affine_kernel(a_ref, c_ref, x_ref, o_ref):
    # o = x * a + c  -- single broadcast FMA; scalars live in SMEM.
    # f32 accumulation keeps the path legal on v5e (no bf16 VALU); the kernel
    # is DMA-bound so the upcast is free.
    a = a_ref[0]
    c = c_ref[0]
    o_ref[...] = (x_ref[...].astype(jnp.float32) * a + c).astype(o_ref.dtype)


def _affine_call(x, a, c, col_offset: int = 0):
    """Compute x[:, col_offset:] * a + c with a tiled, pipelined Pallas call."""
    assert x.ndim == 2, "expected [batch, time] input"
    rows, total_cols = x.shape
    out_cols = total_cols - col_offset
    assert 0 <= col_offset < total_cols and out_cols > 0

    a_arr = jnp.asarray(a, jnp.float32).reshape(1)
    c_arr = jnp.asarray(c, jnp.float32).reshape(1)

    itemsize = jnp.dtype(x.dtype).itemsize
    budget_elems = max(1024, _BLOCK_BUDGET_BYTES // itemsize)
    min_rows = 8 if rows % 8 == 0 else rows

    x_in = x
    off_blocks = 0
    if col_offset == 0:
        bc = _pick_cols(out_cols, budget_elems, min_rows)
    elif col_offset % 128 == 0 and out_cols % 128 == 0:
        # Fold the tail offset directly into the input index_map: bc divides
        # gcd(out_cols, col_offset) so the column-block offset is exact and
        # only the tail columns are ever DMA'd from HBM (no slice copy).
        g = math.gcd(out_cols, col_offset)
        cap = max(128, budget_elems // min_rows)
        bc = _largest_aligned_divisor(g, 128, cap)
        off_blocks = col_offset // bc
    else:
        # TODO(synk): non-128-aligned tail offsets fall back to one wrapper-side
        # slice (extra HBM read+write of the tail) before the kernel runs.
        x_in = x[:, col_offset:]
        bc = _pick_cols(out_cols, budget_elems, min_rows)

    br = _pick_rows(rows, bc, budget_elems)

    # v7x has 2 TensorCores per chip: avoid a 1x1 grid (one TC idle) by
    # splitting the row axis in two when that keeps blocks legal.
    if rows // br == 1 and out_cols // bc == 1 and rows % 16 == 0:
        br = rows // 2

    grid = (rows // br, out_cols // bc)

    return pl.pallas_call(
        _affine_kernel,
        out_shape=jax.ShapeDtypeStruct((rows, out_cols), x.dtype),
        grid=grid,
        in_specs=[
            pl.BlockSpec(memory_space=pltpu.MemorySpace.SMEM),   # scalar a
            pl.BlockSpec(memory_space=pltpu.MemorySpace.SMEM),   # scalar c
            pl.BlockSpec((br, bc), lambda i, j: (i, j + off_blocks)),
        ],
        out_specs=pl.BlockSpec((br, bc), lambda i, j: (i, j)),
        compiler_params=pltpu.CompilerParams(
            # Elementwise, no carried state: both axes parallel (shards the
            # grid across v7x's two TensorCores; harmless on v5e/v6e).
            dimension_semantics=("parallel", "parallel"),
            vmem_limit_bytes=_VMEM_LIMIT_BYTES,
        ),
    )(a_arr, c_arr, x_in)


# ------------------------- module-equivalent wrapper ----------------------- #
class TransformNoZDecoupledPallas:
    """JAX/Pallas re-implementation of TransformNoZDecoupled.

    Parameters are initialized exactly as in the PyTorch module:
    affine_weight = ones(1), affine_bias = zeros(1).
    """

    def __init__(self, tail: int, eps: float = EPS):
        self.tail = tail
        self.eps = eps
        self.affine_weight = jnp.ones((1,), jnp.float32)
        self.affine_bias = jnp.zeros((1,), jnp.float32)
        self.affine_weight_old = None
        self.affine_bias_old = None

    def __call__(self, x, mode: str):
        if mode == "norm":
            return self._normalize(x)
        if mode == "denorm":
            return self._denormalize(x)
        raise NotImplementedError(mode)

    def _normalize(self, x):
        # Snapshot the parameters (as in the torch module's .item()), but keep
        # them as device scalars: no host sync stalling dispatch.
        self.affine_weight_old = self.affine_weight
        self.affine_bias_old = self.affine_bias
        col_offset = x.shape[1] - self.tail
        # TODO(synk): a custom `mapper` nonlinearity would have to be traced
        # into the kernel body; identity (the module default) is implemented.
        return _affine_call(x, self.affine_weight, self.affine_bias,
                            col_offset=col_offset)

    def _denormalize(self, x):
        assert self.affine_weight_old is not None, "call 'norm' before 'denorm'"
        # Hoist the divide to a scalar reciprocal: o = (x - b)/(w + eps^2)
        #                                            = x * inv + (-b * inv)
        inv = 1.0 / (self.affine_weight_old + self.eps * self.eps)
        return _affine_call(x, inv, -self.affine_bias_old * inv, col_offset=0)


# --------------------------------- main ------------------------------------ #
if __name__ == "__main__":
    key = jax.random.PRNGKey(0)
    k_small, k_big = jax.random.split(key)

    # --- small shapes consistent with the module ---------------------------
    batch, seq, tail = 2, 16, 8
    x_small = jax.random.normal(k_small, (batch, seq), dtype=jnp.float32)
    model = TransformNoZDecoupledPallas(tail=tail)
    y = model(x_small, "norm")        # = x[:, -tail:] * 1.0 + 0.0
    z = model(y, "denorm")            # = (y - 0.0) / (1.0 + eps*eps)
    jax.block_until_ready((y, z))

    y_ref = x_small[:, -tail:] * 1.0 + 0.0
    z_ref = (y_ref - 0.0) / (1.0 + EPS * EPS)
    assert jnp.allclose(y, y_ref, atol=1e-6, rtol=1e-6), "normalize mismatch"
    assert jnp.allclose(z, z_ref, atol=1e-6, rtol=1e-6), "denormalize mismatch"

    # --- larger tile-aligned shapes: exercises the pipelined grid, the
    #     folded tail-offset index_map and the 2-block (v7x) row split -------
    big_rows, big_seq, big_tail = 256, 2048, 1024
    x_big = jax.random.normal(k_big, (big_rows, big_seq), dtype=jnp.float32)
    model2 = TransformNoZDecoupledPallas(tail=big_tail)
    model2.affine_weight = jnp.full((1,), 1.5, jnp.float32)
    model2.affine_bias = jnp.full((1,), 0.25, jnp.float32)
    y2 = model2(x_big, "norm")
    z2 = model2(y2, "denorm")
    jax.block_until_ready((y2, z2))

    y2_ref = x_big[:, -big_tail:] * 1.5 + 0.25
    z2_ref = (y2_ref - 0.25) / (1.5 + EPS * EPS)
    assert jnp.allclose(y2, y2_ref, atol=1e-5, rtol=1e-5), "big normalize mismatch"
    assert jnp.allclose(z2, z2_ref, atol=1e-5, rtol=1e-5), "big denormalize mismatch"

    print("KERNEL_OK")
</pallas_src>

<mosaic_0001>
module attributes {stable_mosaic.version = 11 : i64} {
  func.func @_affine_kernel(%arg0: i32, %arg1: i32, %arg2: memref<1xf32, #tpu.memory_space<smem>>, %arg3: memref<1xf32, #tpu.memory_space<smem>>, %arg4: memref<2x8xf32, #tpu.memory_space<vmem>>, %arg5: memref<2x8xf32, #tpu.memory_space<vmem>>) attributes {dimension_semantics = [#tpu.dimension_semantics<parallel>, #tpu.dimension_semantics<parallel>], iteration_bounds = array<i64: 1, 1>, scalar_prefetch = 0 : i64, scratch_operands = 0 : i64, tpu.core_type = #tpu.core_type<tc>, window_params = [{transform_indices = @transform_0, window_bounds = array<i64: 1>}, {transform_indices = @transform_1, window_bounds = array<i64: 1>}, {transform_indices = @transform_2, window_bounds = array<i64: 2, 8>}, {transform_indices = @transform_3, window_bounds = array<i64: 2, 8>}]} {
    %c0 = arith.constant 0 : index
    %0 = memref.load %arg2[%c0] : memref<1xf32, #tpu.memory_space<smem>>
    %c0_0 = arith.constant 0 : index
    %1 = memref.load %arg3[%c0_0] : memref<1xf32, #tpu.memory_space<smem>>
    %c0_1 = arith.constant 0 : index
    %c0_2 = arith.constant 0 : index
    %2 = vector.load %arg4[%c0_1, %c0_2] : memref<2x8xf32, #tpu.memory_space<vmem>>, vector<2x8xf32>
    %3 = vector.broadcast %0 : f32 to vector<2x8xf32>
    %4 = arith.mulf %2, %3 : vector<2x8xf32>
    %5 = vector.broadcast %1 : f32 to vector<2x8xf32>
    %6 = arith.addf %4, %5 : vector<2x8xf32>
    %c0_3 = arith.constant 0 : index
    %c0_4 = arith.constant 0 : index
    %7 = vector.load %arg5[%c0_3, %c0_4] : memref<2x8xf32, #tpu.memory_space<vmem>>, vector<2x8xf32>
    tpu.vector_store %arg5[%c0_3, %c0_4], %6 {strides = array<i32>} : memref<2x8xf32, #tpu.memory_space<vmem>>, vector<2x8xf32>,
    return
  }
  func.func @transform_0(%arg0: i32, %arg1: i32) -> i32 {
    %c0_i32 = arith.constant 0 : i32
    %c0_i32_0 = arith.constant 0 : i32
    return %c0_i32 : i32
  }
  func.func @transform_1(%arg0: i32, %arg1: i32) -> i32 {
    %c0_i32 = arith.constant 0 : i32
    %c0_i32_0 = arith.constant 0 : i32
    return %c0_i32 : i32
  }
  func.func @transform_2(%arg0: i32, %arg1: i32) -> (i32, i32) {
    %c0_i32 = arith.constant 0 : i32
    %0 = arith.addi %arg1, %c0_i32 : i32
    %c0_i32_0 = arith.constant 0 : i32
    return %arg0, %0 : i32, i32
  }
  func.func @transform_3(%arg0: i32, %arg1: i32) -> (i32, i32) {
    %c0_i32 = arith.constant 0 : i32
    return %arg0, %arg1 : i32, i32
  }
}

</mosaic_0001>

<bundles_post_ra>
// kernel: tpu_custom_call.1
= control target key start
LH: loop header
LB: loop body
LE: loop exit
PB: predicated region body
PF: predicated region fallthrough
CT: control target
= control target key end

     0   :  { %s107_s0 = inlined_call_operand.<no memory space> [shape: f32[1], index: 0, kind: input, shape index: {}]   ;;  %s108_s1 = inlined_call_operand.<no memory space> [shape: f32[1], index: 1, kind: input, shape index: {}]   ;;  %s109_s2 = inlined_call_operand.vmem [shape: f32[2,8], index: 2, kind: input, shape index: {}]   ;;  %s110_s3 = inlined_call_operand.hbm [shape: f32[2,8], index: 3, kind: output, shape index: {}]  }
   0x1   :  { %v19_v0 = vld [vmem:[%s109_s2] sm:$0x3]  ;;  %v20_v1 = vstv %s107_s0  ;;  %v22_v2 = vstv %s108_s1 }
   0x2   :  { %10 = vsyncpa [#allocation5], 0  ;;  %v21_v3 = vmul.f32 %v20_v1, %v19_v0  ;;  %s65_s18 = smov [#allocation4]   ;;  %vm24_vm0 = vcmask 58368  }
   0x3   :  { %s32_s19 = sshll.u32 %s65_s18, 4  ;;  %s33_s19 = int_to_ptr.vmem [resolvable:$true] %s32_s19 }
   0x4   :  { %v23_v4 = vadd.f32 %v22_v2, %v21_v3  ;;  %s41_s20 = scalar_lea.vmem %s33_s19, 32  ;;  %p46_p1 = scmp.lt.s32.totalorder %s33_s19, %s33_s19 }
   0x5   :  { %p42_p0 = scmp.ne.s32.totalorder %s33_s19, %s41_s20  ;;  %p47_p2 = scmp.lt.s32.totalorder %s41_s20, %s41_s20 }
   0x6   :  { %25 = vst.msk [vmem:[#allocation4] sm:$0x3] %vm24_vm0, %v23_v4 }
   0x7   :  { %p48_p3 = por %p47_p2, %p46_p1 }
   0x9   :  { %p49_p4 = pnand %p48_p3, %p42_p0 }
   0xb   :  { %52 = shalt.err (!%p49_p4)
}
   0xc   :  { %s53_s21 = scalar_lea.hbm %s110_s3, 32 }
   0xd   :  { %p54_p5 = scmp.ne.s32.totalorder %s110_s3, %s53_s21  ;;  %p57_p6 = scmp.lt.u32.totalorder %s53_s21, %s110_s3 }
   0xf   :  { %p59_p7 = pnand %p57_p6, %p54_p5 }
  0x11   :  { %62 = shalt.err (!%p59_p7)
}
  0x12   :  { %35 = dma.vmem_to_hbm [thread:$0]  %s33_s19, 32, %s110_s3, [#allocation5]  }
  0x13   :  { %63 = dma.done.wait [#allocation5], 32  }
  0x14   :  { %64 = vsyncadd [#allocation5], 4294967264 }
  0x15   :  { %39 = vsyncpa [#allocation5], 1 }

</bundles_post_ra>
